<compile_context>
chip_gen: v7x
topology: tpu7x:2x2x1
jax: 0.10.0
libtpu: 0.0.40
codegen_flags: <defaults>
</compile_context>

<pallas_src>
import functools

import jax
import jax.numpy as jnp
from jax import lax
from jax.experimental import pallas as pl
from jax.experimental.pallas import tpu as pltpu

LOG_SIG_MAX = 2.0
LOG_SIG_MIN = -5.0

LANE = 128


def _round_up(x, m):
    return ((x + m - 1) // m) * m


def _swish(h):
    # EUP-friendly Swish: exp + reciprocal both go to the EUP slot.
    return h * pl.reciprocal(1.0 + jnp.exp(-h))


def gaussian_policy_kernel(x_ref, w1_ref, b1_ref, w2_ref, b2_ref,
                           wh_ref, bh_ref, out_ref, *, num_actions):
    x = x_ref[...]

    # linear1 + Swish
    h = jnp.dot(x, w1_ref[...], preferred_element_type=jnp.float32) + b1_ref[...]
    h = _swish(h)

    # linear2 + Swish
    h = jnp.dot(h, w2_ref[...], preferred_element_type=jnp.float32) + b2_ref[...]
    h = _swish(h)

    # fused heads: one matmul against [wm | ws | pad]  -> (TILE_B, HEAD_PAD)
    out = jnp.dot(h, wh_ref[...], preferred_element_type=jnp.float32) + bh_ref[...]

    # clamp only the log_std columns [num_actions, 2*num_actions)
    col = lax.broadcasted_iota(jnp.int32, out.shape, 1)
    is_log_std = (col >= num_actions) & (col < 2 * num_actions)
    out = jnp.where(is_log_std, jnp.clip(out, LOG_SIG_MIN, LOG_SIG_MAX), out)

    out_ref[...] = out.astype(out_ref.dtype)


def gaussian_policy_forward(state, params, *, tile_b=256):
    """Fused forward pass. state: (B, num_inputs) f32 -> (mean, log_std)."""
    B, num_inputs = state.shape
    hidden_dim = params["w1"].shape[1]
    num_actions = params["wm"].shape[1]
    two_a = 2 * num_actions

    # --- fuse heads + pad to a lane-dense output width (multiple of 128) ---
    head_pad = max(LANE, _round_up(two_a, LANE))
    wh = jnp.concatenate([params["wm"], params["ws"]], axis=1)
    bh = jnp.concatenate([params["bm"], params["bs"]], axis=1)
    if head_pad != two_a:
        wh = jnp.pad(wh, ((0, 0), (0, head_pad - two_a)))
        bh = jnp.pad(bh, ((0, 0), (0, head_pad - two_a)))

    # --- pad batch to a multiple of the row tile (tile is a multiple of 8) ---
    tb = min(tile_b, _round_up(B, 8))
    tb = _round_up(tb, 8)
    Bp = _round_up(B, tb)
    if Bp != B:
        state = jnp.pad(state, ((0, Bp - B), (0, 0)))

    grid = (Bp // tb,)
    kernel = functools.partial(gaussian_policy_kernel, num_actions=num_actions)

    out = pl.pallas_call(
        kernel,
        out_shape=jax.ShapeDtypeStruct((Bp, head_pad), jnp.float32),
        grid_spec=pltpu.PrefetchScalarGridSpec(
            num_scalar_prefetch=0,
            grid=grid,
            in_specs=[
                # state: tiled over batch
                pl.BlockSpec((tb, num_inputs), lambda i: (i, 0)),
                # weights / biases: constant index_map -> resident in VMEM
                pl.BlockSpec((num_inputs, hidden_dim), lambda i: (0, 0)),
                pl.BlockSpec((1, hidden_dim), lambda i: (0, 0)),
                pl.BlockSpec((hidden_dim, hidden_dim), lambda i: (0, 0)),
                pl.BlockSpec((1, hidden_dim), lambda i: (0, 0)),
                pl.BlockSpec((hidden_dim, head_pad), lambda i: (0, 0)),
                pl.BlockSpec((1, head_pad), lambda i: (0, 0)),
            ],
            out_specs=pl.BlockSpec((tb, head_pad), lambda i: (i, 0)),
        ),
        compiler_params=pltpu.CompilerParams(
            dimension_semantics=("parallel",),
        ),
    )(state, params["w1"], params["b1"], params["w2"], params["b2"], wh, bh)

    # free layout plumbing: slice the lane-dense slab back into the two heads
    mean = out[:B, :num_actions]
    log_std = out[:B, num_actions:two_a]
    return mean, log_std


def xavier_uniform(key, fan_in, fan_out, gain=1.0):
    # matches torch.nn.init.xavier_uniform_ (gain=1); stored as (in, out)
    limit = gain * jnp.sqrt(6.0 / (fan_in + fan_out))
    return jax.random.uniform(key, (fan_in, fan_out), jnp.float32, -limit, limit)


def init_params(key, num_inputs, num_actions, hidden_dim):
    k1, k2, k3, k4 = jax.random.split(key, 4)
    return {
        "w1": xavier_uniform(k1, num_inputs, hidden_dim),
        "b1": jnp.zeros((1, hidden_dim), jnp.float32),
        "w2": xavier_uniform(k2, hidden_dim, hidden_dim),
        "b2": jnp.zeros((1, hidden_dim), jnp.float32),
        "wm": xavier_uniform(k3, hidden_dim, num_actions),
        "bm": jnp.zeros((1, num_actions), jnp.float32),
        "ws": xavier_uniform(k4, hidden_dim, num_actions),
        "bs": jnp.zeros((1, num_actions), jnp.float32),
    }


def reference_forward(state, p):
    h = state @ p["w1"] + p["b1"]
    h = h * jax.nn.sigmoid(h)
    h = h @ p["w2"] + p["b2"]
    h = h * jax.nn.sigmoid(h)
    mean = h @ p["wm"] + p["bm"]
    log_std = jnp.clip(h @ p["ws"] + p["bs"], LOG_SIG_MIN, LOG_SIG_MAX)
    return mean, log_std


if __name__ == "__main__":
    num_inputs, num_actions, hidden_dim = 16, 8, 32
    batch = 8

    key = jax.random.PRNGKey(0)
    k_param, k_state = jax.random.split(key)
    params = init_params(k_param, num_inputs, num_actions, hidden_dim)
    state = jax.random.normal(k_state, (batch, num_inputs), jnp.float32)

    mean, log_std = gaussian_policy_forward(state, params)
    mean, log_std = jax.block_until_ready((mean, log_std))

    ref_mean, ref_log_std = reference_forward(state, params)
    assert mean.shape == (batch, num_actions)
    assert log_std.shape == (batch, num_actions)
    assert jnp.allclose(mean, ref_mean, atol=1e-5, rtol=1e-5)
    assert jnp.allclose(log_std, ref_log_std, atol=1e-5, rtol=1e-5)
    assert float(log_std.max()) <= LOG_SIG_MAX and float(log_std.min()) >= LOG_SIG_MIN

    # also exercise a batch that is tiled over the grid (non-trivial, non-multiple of tile)
    big_state = jax.random.normal(jax.random.PRNGKey(1), (300, num_inputs), jnp.float32)
    bmean, blog_std = jax.block_until_ready(
        gaussian_policy_forward(big_state, params, tile_b=128))
    rmean, rlog_std = reference_forward(big_state, params)
    assert jnp.allclose(bmean, rmean, atol=1e-5, rtol=1e-5)
    assert jnp.allclose(blog_std, rlog_std, atol=1e-5, rtol=1e-5)

    print("KERNEL_OK")
</pallas_src>

<mosaic_0001>
module attributes {stable_mosaic.version = 11 : i64} {
  func.func @gaussian_policy_kernel(%arg0: i32, %arg1: memref<8x16xf32, #tpu.memory_space<vmem>>, %arg2: memref<16x32xf32, #tpu.memory_space<vmem>>, %arg3: memref<1x32xf32, #tpu.memory_space<vmem>>, %arg4: memref<32x32xf32, #tpu.memory_space<vmem>>, %arg5: memref<1x32xf32, #tpu.memory_space<vmem>>, %arg6: memref<32x128xf32, #tpu.memory_space<vmem>>, %arg7: memref<1x128xf32, #tpu.memory_space<vmem>>, %arg8: memref<8x128xf32, #tpu.memory_space<vmem>>) attributes {dimension_semantics = [#tpu.dimension_semantics<parallel>], iteration_bounds = array<i64: 1>, scalar_prefetch = 0 : i64, scratch_operands = 0 : i64, tpu.core_type = #tpu.core_type<tc>, window_params = [{transform_indices = @transform_0, window_bounds = array<i64: 8, 16>}, {pipeline_mode = #tpu.pipeline_mode<synchronous>, transform_indices = @transform_1, window_bounds = array<i64: 16, 32>}, {pipeline_mode = #tpu.pipeline_mode<synchronous>, transform_indices = @transform_2, window_bounds = array<i64: 1, 32>}, {pipeline_mode = #tpu.pipeline_mode<synchronous>, transform_indices = @transform_3, window_bounds = array<i64: 32, 32>}, {pipeline_mode = #tpu.pipeline_mode<synchronous>, transform_indices = @transform_4, window_bounds = array<i64: 1, 32>}, {pipeline_mode = #tpu.pipeline_mode<synchronous>, transform_indices = @transform_5, window_bounds = array<i64: 32, 128>}, {pipeline_mode = #tpu.pipeline_mode<synchronous>, transform_indices = @transform_6, window_bounds = array<i64: 1, 128>}, {transform_indices = @transform_7, window_bounds = array<i64: 8, 128>}]} {
    %c0 = arith.constant 0 : index
    %c0_0 = arith.constant 0 : index
    %0 = vector.load %arg1[%c0, %c0_0] : memref<8x16xf32, #tpu.memory_space<vmem>>, vector<8x16xf32>
    %c0_1 = arith.constant 0 : index
    %c0_2 = arith.constant 0 : index
    %1 = vector.load %arg2[%c0_1, %c0_2] : memref<16x32xf32, #tpu.memory_space<vmem>>, vector<16x32xf32>
    %cst = arith.constant dense<0.000000e+00> : vector<8x32xf32>
    %2 = tpu.matmul %0, %1, %cst {dimension_numbers = #tpu.dot_dimension_numbers<[1], [0], [0], [1], [0, 0, 1, 1], [], []>} : vector<8x16xf32>, vector<16x32xf32>, vector<8x32xf32> -> vector<8x32xf32>
    %c0_3 = arith.constant 0 : index
    %c0_4 = arith.constant 0 : index
    %3 = vector.load %arg3[%c0_3, %c0_4] : memref<1x32xf32, #tpu.memory_space<vmem>>, vector<1x32xf32>
    %4 = vector.broadcast %3 : vector<1x32xf32> to vector<8x32xf32>
    %5 = arith.addf %2, %4 : vector<8x32xf32>
    %cst_5 = arith.constant 0.000000e+00 : f32
    %6 = vector.broadcast %cst_5 : f32 to vector<8x32xf32>
    %7 = arith.subf %6, %5 : vector<8x32xf32>
    %8 = math.exp %7 : vector<8x32xf32>
    %cst_6 = arith.constant 1.000000e+00 : f32
    %9 = vector.broadcast %cst_6 : f32 to vector<8x32xf32>
    %10 = arith.addf %9, %8 : vector<8x32xf32>
    %11 = tpu.reciprocal %10 : vector<8x32xf32> -> vector<8x32xf32>
    %12 = arith.mulf %5, %11 : vector<8x32xf32>
    %c0_7 = arith.constant 0 : index
    %c0_8 = arith.constant 0 : index
    %13 = vector.load %arg4[%c0_7, %c0_8] : memref<32x32xf32, #tpu.memory_space<vmem>>, vector<32x32xf32>
    %cst_9 = arith.constant dense<0.000000e+00> : vector<8x32xf32>
    %14 = tpu.matmul %12, %13, %cst_9 {dimension_numbers = #tpu.dot_dimension_numbers<[1], [0], [0], [1], [0, 0, 1, 1], [], []>} : vector<8x32xf32>, vector<32x32xf32>, vector<8x32xf32> -> vector<8x32xf32>
    %c0_10 = arith.constant 0 : index
    %c0_11 = arith.constant 0 : index
    %15 = vector.load %arg5[%c0_10, %c0_11] : memref<1x32xf32, #tpu.memory_space<vmem>>, vector<1x32xf32>
    %16 = vector.broadcast %15 : vector<1x32xf32> to vector<8x32xf32>
    %17 = arith.addf %14, %16 : vector<8x32xf32>
    %cst_12 = arith.constant 0.000000e+00 : f32
    %18 = vector.broadcast %cst_12 : f32 to vector<8x32xf32>
    %19 = arith.subf %18, %17 : vector<8x32xf32>
    %20 = math.exp %19 : vector<8x32xf32>
    %cst_13 = arith.constant 1.000000e+00 : f32
    %21 = vector.broadcast %cst_13 : f32 to vector<8x32xf32>
    %22 = arith.addf %21, %20 : vector<8x32xf32>
    %23 = tpu.reciprocal %22 : vector<8x32xf32> -> vector<8x32xf32>
    %24 = arith.mulf %17, %23 : vector<8x32xf32>
    %c0_14 = arith.constant 0 : index
    %c0_15 = arith.constant 0 : index
    %25 = vector.load %arg6[%c0_14, %c0_15] : memref<32x128xf32, #tpu.memory_space<vmem>>, vector<32x128xf32>
    %cst_16 = arith.constant dense<0.000000e+00> : vector<8x128xf32>
    %26 = tpu.matmul %24, %25, %cst_16 {dimension_numbers = #tpu.dot_dimension_numbers<[1], [0], [0], [1], [0, 0, 1, 1], [], []>} : vector<8x32xf32>, vector<32x128xf32>, vector<8x128xf32> -> vector<8x128xf32>
    %c0_17 = arith.constant 0 : index
    %c0_18 = arith.constant 0 : index
    %27 = vector.load %arg7[%c0_17, %c0_18] : memref<1x128xf32, #tpu.memory_space<vmem>>, vector<1x128xf32>
    %28 = vector.broadcast %27 : vector<1x128xf32> to vector<8x128xf32>
    %29 = arith.addf %26, %28 : vector<8x128xf32>
    %30 = tpu.iota {dimensions = array<i32: 1>} : vector<8x128xi32>
    %c8_i32 = arith.constant 8 : i32
    %31 = vector.broadcast %c8_i32 : i32 to vector<8x128xi32>
    %32 = arith.cmpi sge, %30, %31 : vector<8x128xi32>
    %c16_i32 = arith.constant 16 : i32
    %33 = vector.broadcast %c16_i32 : i32 to vector<8x128xi32>
    %34 = arith.cmpi slt, %30, %33 : vector<8x128xi32>
    %35 = arith.andi %32, %34 : vector<8x128xi1>
    %cst_19 = arith.constant -5.000000e+00 : f32
    %cst_20 = arith.constant 2.000000e+00 : f32
    %36 = vector.broadcast %cst_19 : f32 to vector<8x128xf32>
    %37 = arith.maximumf %36, %29 : vector<8x128xf32>
    %38 = vector.broadcast %cst_20 : f32 to vector<8x128xf32>
    %39 = arith.minimumf %38, %37 : vector<8x128xf32>
    %40 = arith.select %35, %39, %29 : vector<8x128xi1>, vector<8x128xf32>
    %c0_21 = arith.constant 0 : index
    %c0_22 = arith.constant 0 : index
    %41 = vector.load %arg8[%c0_21, %c0_22] : memref<8x128xf32, #tpu.memory_space<vmem>>, vector<8x128xf32>
    tpu.vector_store %arg8[%c0_21, %c0_22], %40 {strides = array<i32>} : memref<8x128xf32, #tpu.memory_space<vmem>>, vector<8x128xf32>,
    return
  }
  func.func @transform_0(%arg0: i32) -> (i32, i32) {
    %c0_i32 = arith.constant 0 : i32
    %c0_i32_0 = arith.constant 0 : i32
    return %arg0, %c0_i32 : i32, i32
  }
  func.func @transform_1(%arg0: i32) -> (i32, i32) {
    %c0_i32 = arith.constant 0 : i32
    %c0_i32_0 = arith.constant 0 : i32
    %c0_i32_1 = arith.constant 0 : i32
    return %c0_i32, %c0_i32_0 : i32, i32
  }
  func.func @transform_2(%arg0: i32) -> (i32, i32) {
    %c0_i32 = arith.constant 0 : i32
    %c0_i32_0 = arith.constant 0 : i32
    %c0_i32_1 = arith.constant 0 : i32
    return %c0_i32, %c0_i32_0 : i32, i32
  }
  func.func @transform_3(%arg0: i32) -> (i32, i32) {
    %c0_i32 = arith.constant 0 : i32
    %c0_i32_0 = arith.constant 0 : i32
    %c0_i32_1 = arith.constant 0 : i32
    return %c0_i32, %c0_i32_0 : i32, i32
  }
  func.func @transform_4(%arg0: i32) -> (i32, i32) {
    %c0_i32 = arith.constant 0 : i32
    %c0_i32_0 = arith.constant 0 : i32
    %c0_i32_1 = arith.constant 0 : i32
    return %c0_i32, %c0_i32_0 : i32, i32
  }
  func.func @transform_5(%arg0: i32) -> (i32, i32) {
    %c0_i32 = arith.constant 0 : i32
    %c0_i32_0 = arith.constant 0 : i32
    %c0_i32_1 = arith.constant 0 : i32
    return %c0_i32, %c0_i32_0 : i32, i32
  }
  func.func @transform_6(%arg0: i32) -> (i32, i32) {
    %c0_i32 = arith.constant 0 : i32
    %c0_i32_0 = arith.constant 0 : i32
    %c0_i32_1 = arith.constant 0 : i32
    return %c0_i32, %c0_i32_0 : i32, i32
  }
  func.func @transform_7(%arg0: i32) -> (i32, i32) {
    %c0_i32 = arith.constant 0 : i32
    %c0_i32_0 = arith.constant 0 : i32
    return %arg0, %c0_i32 : i32, i32
  }
}

</mosaic_0001>

<bundles_post_ra>
// kernel: tpu_custom_call.1
= control target key start
LH: loop header
LB: loop body
LE: loop exit
PB: predicated region body
PF: predicated region fallthrough
CT: control target
= control target key end

     0   :  { %12 = vsyncpa [#allocation3], 0  ;;  %s700_s0 = inlined_call_operand.hbm [shape: f32[8,16], index: 0, kind: input, shape index: {}]   ;;  %s701_s1 = inlined_call_operand.hbm [shape: f32[16,32], index: 1, kind: input, shape index: {}]   ;;  %s702_s2 = inlined_call_operand.vmem [shape: f32[1,32], index: 2, kind: input, shape index: {}]   ;;  %s703_s3 = inlined_call_operand.hbm [shape: f32[32,32], index: 3, kind: input, shape index: {}]   ;;  %s704_s4 = inlined_call_operand.vmem [shape: f32[1,32], index: 4, kind: input, shape index: {}]   ;;  %s705_s5 = inlined_call_operand.hbm [shape: f32[32,128], index: 5, kind: input, shape index: {}]   ;;  %s706_s6 = inlined_call_operand.vmem [shape: f32[1,128], index: 6, kind: input, shape index: {}]   ;;  %s707_s7 = inlined_call_operand.hbm [shape: f32[8,128], index: 7, kind: output, shape index: {}]  }
   0x1   :  { %13 = vsyncpa [#allocation6], 0 }
   0x2   :  { %14 = vsyncpa [#allocation9], 0 }
   0x3   :  { %15 = vsyncpa [#allocation4], 0  ;;  %s570_s24 = smov [#allocation5]   ;;  %s452_s28 = scalar_lea.hbm %s701_s1, 256 }
   0x4   :  { %s31_s25 = sshll.u32 %s570_s24, 4  ;;  %p453_p0 = scmp.ne.s32.totalorder %s701_s1, %s452_s28  ;;  %s32_s25 = int_to_ptr.vmem [resolvable:$true] %s31_s25 }
   0x5   :  { %p456_p1 = scmp.lt.u32.totalorder %s452_s28, %s701_s1 }
   0x7   :  { %p458_p2 = pnand %p456_p1, %p453_p0 }
   0x9   :  { %461 = shalt.err (!%p458_p2)
}
   0xa   :  { %s462_s10 = scalar_lea.vmem %s32_s25, 256  ;;  %p467_p4 = scmp.lt.s32.totalorder %s32_s25, %s32_s25 }
   0xb   :  { %p463_p3 = scmp.ne.s32.totalorder %s32_s25, %s462_s10  ;;  %p468_p5 = scmp.lt.s32.totalorder %s462_s10, %s462_s10 }
   0xd   :  { %p469_p6 = por %p468_p5, %p467_p4 }
   0xf   :  { %p470_p7 = pnand %p469_p6, %p463_p3 }
  0x11   :  { %473 = shalt.err (!%p470_p7)
}
  0x12   :  { %s571_s11 = smov 128   ;;  %s572_s12 = smov 8  }
  0x13   :  { %37 = dma.hbm_to_vmem [thread:$0]  %s701_s1, 256, %s32_s25, [#allocation6], %s571_s11, %s571_s11, %s572_s12  }
  0x14   :  { %s573_s15 = smov [#allocation2]   ;;  %s574_s17 = smov [#allocation7]  }
  0x15   :  { %s22_s16 = sshll.u32 %s573_s15, 4  ;;  %s45_s18 = sshll.u32 %s574_s17, 4  ;;  %s23_s16 = int_to_ptr.vmem [resolvable:$true] %s22_s16  ;;  %s46_s18 = int_to_ptr.vmem [resolvable:$true] %s45_s18 }
  0x16   :  { %s474_s21 = scalar_lea.hbm %s700_s0, 128 }
  0x17   :  { %p475_p8 = scmp.ne.s32.totalorder %s700_s0, %s474_s21  ;;  %p478_p9 = scmp.lt.u32.totalorder %s474_s21, %s700_s0 }
  0x19   :  { %p480_p10 = pnand %p478_p9, %p475_p8 }
  0x1b   :  { %483 = shalt.err (!%p480_p10)
}
  0x1c   :  { %s484_s1 = scalar_lea.vmem %s23_s16, 128  ;;  %p489_p12 = scmp.lt.s32.totalorder %s23_s16, %s23_s16 }
  0x1d   :  { %p485_p11 = scmp.ne.s32.totalorder %s23_s16, %s484_s1  ;;  %p490_p13 = scmp.lt.s32.totalorder %s484_s1, %s484_s1 }
  0x1f   :  { %p491_p0 = por %p490_p13, %p489_p12 }
  0x21   :  { %p492_p1 = pnand %p491_p0, %p485_p11 }
  0x23   :  { %495 = shalt.err (!%p492_p1)
}
  0x24   :  { %25 = dma.hbm_to_vmem [thread:$0]  %s700_s0, 128, %s23_s16, [#allocation3]  }
  0x25   :  { %s496_s30 = scalar_lea.hbm %s703_s3, 512 }
  0x26   :  { %p497_p2 = scmp.ne.s32.totalorder %s703_s3, %s496_s30  ;;  %p500_p3 = scmp.lt.u32.totalorder %s496_s30, %s703_s3 }
  0x28   :  { %p502_p4 = pnand %p500_p3, %p497_p2 }
  0x2a   :  { %505 = shalt.err (!%p502_p4)
}
  0x2b   :  { %s506_s14 = scalar_lea.vmem %s46_s18, 512  ;;  %p511_p6 = scmp.lt.s32.totalorder %s46_s18, %s46_s18 }
  0x2c   :  { %p507_p5 = scmp.ne.s32.totalorder %s46_s18, %s506_s14  ;;  %p512_p7 = scmp.lt.s32.totalorder %s506_s14, %s506_s14 }
  0x2e   :  { %p513_p8 = por %p512_p7, %p511_p6 }
  0x30   :  { %p514_p9 = pnand %p513_p8, %p507_p5 }
  0x32   :  { %517 = shalt.err (!%p514_p9)
}
  0x33   :  { %51 = dma.hbm_to_vmem [thread:$0]  %s703_s3, 512, %s46_s18, [#allocation6], %s571_s11, %s571_s11, %s572_s12  }
  0x34   :  { %s575_s16 = smov [#allocation8]   ;;  %s518_s21 = scalar_lea.hbm %s705_s5, 512 }
  0x35   :  { %s59_s17 = sshll.u32 %s575_s16, 4  ;;  %p519_p10 = scmp.ne.s32.totalorder %s705_s5, %s518_s21  ;;  %s60_s17 = int_to_ptr.vmem [resolvable:$true] %s59_s17 }
  0x36   :  { %p522_p11 = scmp.lt.u32.totalorder %s518_s21, %s705_s5 }
  0x38   :  { %p524_p12 = pnand %p522_p11, %p519_p10 }
  0x3a   :  { %527 = shalt.err (!%p524_p12)
}
  0x3b   :  { %s528_s1 = scalar_lea.vmem %s60_s17, 512  ;;  %p533_p0 = scmp.lt.s32.totalorder %s60_s17, %s60_s17 }
  0x3c   :  { %p529_p13 = scmp.ne.s32.totalorder %s60_s17, %s528_s1  ;;  %p534_p1 = scmp.lt.s32.totalorder %s528_s1, %s528_s1 }
  0x3e   :  { %p535_p2 = por %p534_p1, %p533_p0 }
  0x40   :  { %p536_p3 = pnand %p535_p2, %p529_p13 }
  0x42   :  { %539 = shalt.err (!%p536_p3)
}
  0x43   :  { %65 = dma.hbm_to_vmem [thread:$0]  %s705_s5, 512, %s60_s17, [#allocation9], %s571_s11, %s571_s11, %s572_s12  }
  0x44   :  { %562 = dma.done.wait [#allocation3], 128  }
  0x45   :  { %563 = vsyncadd [#allocation3], 4294967168 }
  0x46   :  { %564 = dma.done.wait [#allocation6], 768  }
  0x47   :  { %565 = vsyncadd [#allocation6], 4294966528 }
  0x48   :  { %566 = dma.done.wait [#allocation9], 512  }
  0x49   :  { %567 = vsyncadd [#allocation9], 4294966784  ;;  %v576_v0 = vmov 0.0|0.0   ;;  %vm577_vm0 = vmmov 0   ;;  %v578_v1 = vmov 0.0   ;;  %v81_v2 = vld [vmem:[#allocation5] sm:$0xff]  ;;  %v345_v38 = vlaneseq }
  0x4a   :  { %419 = vmatprep.subr.bf16.mxu0 %v576_v0  ;;  %394 = vmatprep.mubr.msk.f32.mxu0 %vm577_vm0, %v578_v1  ;;  %v82_v3 = vld [vmem:[#allocation5 + $0x8] sm:$0xff]  ;;  %v80_v5 = vld [vmem:[#allocation2] sm:$0xff]  ;;  %vm90_vm1 = vcmask 130048   ;;  %v170_v6 = vld [vmem:[#allocation7] sm:$0xff]  ;;  %vm181_vm2 = vcmask 261120  }
  0x4b   :  { %422 = vmatprep.subr.bf16.mxu1 %v576_v0  ;;  %405 = vmatprep.mubr.msk.f32.mxu1 %vm577_vm0, %v578_v1  ;;  %v420_v4 = vpack.c.bf16 %v82_v3, %v81_v2  ;;  %v171_v7 = vld [vmem:[#allocation7 + $0x8] sm:$0xff]  ;;  %v172_v9 = vld [vmem:[#allocation7 + $0x10] sm:$0xff]  ;;  %v173_v10 = vld [vmem:[#allocation7 + $0x18] sm:$0xff]  ;;  %v346_v39 = vand.u32 127, %v345_v38 }
  0x4c   :  { %v423_v8 = vpack.c.bf16 %v171_v7, %v170_v6  ;;  %v426_v11 = vpack.c.bf16 %v173_v10, %v172_v9  ;;  %v371_v12 = vld [vmem:[%s702_s2] ss:$0 sm:$0xff]  ;;  %v261_v22 = vld [vmem:[#allocation8] sm:$0xff]  ;;  %v263_v25 = vld [vmem:[#allocation8 + $0x10] sm:$0xff] }
  0x4d   :  { %421 = vmatpush3.bf16.msra.mxu0 %v420_v4  ;;  %v262_v23 = vld [vmem:[#allocation8 + $0x8] sm:$0xff]  ;;  %v264_v26 = vld [vmem:[#allocation8 + $0x18] sm:$0xff]  ;;  %vm347_vm3 = vcmp.ge.s32.totalorder %v346_v39, 8  ;;  %vm348_vm4 = vcmp.lt.s32.totalorder %v346_v39, 16 }
  0x4e   :  { %428 = vmatprep.subr.bf16.mxu0 %v576_v0  ;;  %424 = vmatpush3.bf16.msra.mxu1 %v423_v8  ;;  %v429_v24 = vpack.c.bf16 %v262_v23, %v261_v22  ;;  %v432_v27 = vpack.c.bf16 %v264_v26, %v263_v25  ;;  %v373_v28 = vld [vmem:[%s704_s4] ss:$0 sm:$0xff]  ;;  %s579_s4 = smov [#allocation10]   ;;  %vm349_vm5 = vmand %vm347_vm3, %vm348_vm4 }
  0x4f   :  { %425 = vmatprep.subr.bf16.mxu1 %v576_v0  ;;  %v375_v40 = vld [vmem:[%s706_s6] ss:$0 sm:$0xff]  ;;  %s360_s28 = sshll.u32 %s579_s4, 4  ;;  %s361_s28 = int_to_ptr.vmem [resolvable:$true] %s360_s28 }
  0x50   :  { %395 = vmatmul.mubr.msk.f32.vlgmr.msra.gmra.mrb[0].mxu0 %vm90_vm1, %v80_v5  ;;  %s540_s29 = scalar_lea.vmem %s361_s28, 128  ;;  %p545_p5 = scmp.lt.s32.totalorder %s361_s28, %s361_s28 }
  0x51   :  { %416 = vmatprep.mubr.msk.f32.mxu0 %vm577_vm0, %v578_v1  ;;  %430 = vmatpush3.bf16.msra.mxu0 %v429_v24  ;;  %p541_p4 = scmp.ne.s32.totalorder %s361_s28, %s540_s29  ;;  %p546_p6 = scmp.lt.s32.totalorder %s540_s29, %s540_s29 }
  0x52   :  { %427 = vmatpush3.bf16.msra.mxu1 %v426_v11  ;;  %431 = vmatprep.subr.bf16.mxu0 %v576_v0 }
  0x53   :  { %p547_p7 = por %p546_p6, %p545_p5 }
  0x55   :  { %433 = vmatpush3.bf16.msra.mxu0 %v432_v27  ;;  %p548_p8 = pnand %p547_p7, %p541_p4 }
 0x123   :  { %v160_v13 = vpop.f32.mrb[0].mxu0 }
 0x124   :  { %v161_v14 = vadd.f32 %v371_v12, %v160_v13  ;;  %v396_v15 = vpop.f32.mrb[1].mxu0 }
 0x126   :  { %v164_v16 = vsub.f32 0.0, %v161_v14 }
 0x128   :  { %v165_v17 = vmul.f32 1.442695, %v164_v16 }
 0x12a   :  { %444 = vpow2.f32 %v165_v17 }
 0x134   :  { %v445_v18 = vpop.eup %444 }
 0x135   :  { %v167_v19 = vadd.f32 1.0, %v445_v18 }
 0x137   :  { %446 = vrcp.f32 %v167_v19 }
 0x141   :  { %v447_v20 = vpop.eup %446 }
 0x142   :  { %v169_v21 = vmul.f32 %v447_v20, %v161_v14 }
 0x144   :  { %406 = vmatmul.mubr.msk.f32.vlgmr.msra.gmra.mrb[0].mxu1 %vm181_vm2, %v169_v21 }
 0x217   :  { %v251_v29 = vpop.f32.mrb[0].mxu1 }
 0x218   :  { %v252_v30 = vadd.f32 %v373_v28, %v251_v29  ;;  %v407_v31 = vpop.f32.mrb[1].mxu1 }
 0x21a   :  { %v255_v32 = vsub.f32 0.0, %v252_v30 }
 0x21c   :  { %v256_v33 = vmul.f32 1.442695, %v255_v32 }
 0x21e   :  { %448 = vpow2.f32 %v256_v33 }
 0x228   :  { %v449_v34 = vpop.eup %448 }
 0x229   :  { %v258_v35 = vadd.f32 1.0, %v449_v34 }
 0x22b   :  { %450 = vrcp.f32 %v258_v35 }
 0x235   :  { %v451_v36 = vpop.eup %450 }
 0x236   :  { %v260_v37 = vmul.f32 %v451_v36, %v252_v30 }
 0x238   :  { %417 = vmatmul.mubr.msk.f32.vlgmr.msra.gmra.mrb[2].mxu0 %vm181_vm2, %v260_v37 }
 0x30b   :  { %v341_v41 = vpop.f32.mrb[2].mxu0 }
 0x30c   :  { %v342_v42 = vadd.f32 %v375_v40, %v341_v41  ;;  %v418_v43 = vpop.f32.mrb[3].mxu0 }
 0x30e   :  { %v350_v44 = vmax.f32 %v342_v42, -5.0 }
 0x310   :  { %v351_v45 = vmin.f32 %v350_v44, 2.0 }
 0x312   :  { %v352_v46 = vsel %vm349_vm5, %v351_v45, %v342_v42 }
 0x313   :  { %353 = vst [vmem:[#allocation10] sm:$0xff] %v352_v46 }
 0x314   :  { %551 = shalt.err (!%p548_p8)
}
 0x315   :  { %s552_s8 = scalar_lea.hbm %s707_s7, 128 }
 0x316   :  { %p553_p9 = scmp.ne.s32.totalorder %s707_s7, %s552_s8  ;;  %p556_p10 = scmp.lt.u32.totalorder %s552_s8, %s707_s7 }
 0x318   :  { %p558_p11 = pnand %p556_p10, %p553_p9 }
 0x31a   :  { %561 = shalt.err (!%p558_p11)
}
 0x31b   :  { %363 = dma.vmem_to_hbm [thread:$0]  %s361_s28, 128, %s707_s7, [#allocation4]  }
 0x31c   :  { %568 = dma.done.wait [#allocation4], 128  }
 0x31d   :  { %569 = vsyncadd [#allocation4], 4294967168 }
 0x31e   :  { %367 = vsyncpa [#allocation3], 1 }
 0x31f   :  { %368 = vsyncpa [#allocation6], 1 }
 0x320   :  { %369 = vsyncpa [#allocation9], 1 }
 0x321   :  { %370 = vsyncpa [#allocation4], 1 }

</bundles_post_ra>
